<compile_context>
chip_gen: v5e
topology: v5e:2x2
jax: 0.10.0
libtpu: 0.0.40
codegen_flags: <defaults>
</compile_context>

<pallas_src>
import functools
import math

import jax
import jax.numpy as jnp
from jax.experimental import pallas as pl
from jax.experimental.pallas import tpu as pltpu

ALPHA = 0.25
GAMMA = 2.0          # gamma=2 is hard-coded as (1-p)^2 / p^2 below
LANES = 128
MAX_BLOCK_ROWS = 2048  # 2048*128*4 B = 1 MiB per input block (f32)


def _focal_kernel(x_ref, t_ref, loss_ref, npos_ref, *,
                  total, block_rows, needs_mask):
    """One grid step: sigmoid focal loss partial sums for a (block_rows, 128) tile.

    x_ref, t_ref       : (block_rows, LANES) f32 VMEM tiles
    loss_ref, npos_ref : (1, 1, LANES) f32 per-block per-lane partial sums
    """
    x = x_ref[...].astype(jnp.float32)
    t = t_ref[...].astype(jnp.float32)

    if needs_mask:
        # Ragged tail: zero out contributions of elements with flat index >= total
        # (covers both lane-padding and a partial last grid block).
        row0 = pl.program_id(0) * block_rows
        rows = jax.lax.broadcasted_iota(jnp.int32, x.shape, 0) + row0
        cols = jax.lax.broadcasted_iota(jnp.int32, x.shape, 1)
        valid = (rows * LANES + cols) < total
        x = jnp.where(valid, x, 0.0)
        t = jnp.where(valid, t, 0.0)

    # Numerically-stable sigmoid focal loss pieces (1 exp, 1 log1p, 1 recip):
    #   e         = exp(-|x|)
    #   softplus  = log1p(e)                    = -log(sigmoid(|x|))
    #   p         = sigmoid(x)
    #   -log(p)   = max(-x, 0) + softplus
    #   -log(1-p) = max( x, 0) + softplus
    e = jnp.exp(-jnp.abs(x))
    sp = jnp.log1p(e)
    # sigmoid(x) = [x>=0 ? 1 : e] / (1 + e)   (avoids a second exp)
    p = jnp.where(x >= 0.0, 1.0, e) * pl.reciprocal(1.0 + e, approx=False)
    nlog_p = jnp.maximum(-x, 0.0) + sp
    nlog_1mp = jnp.maximum(x, 0.0) + sp

    one_m_p = 1.0 - p
    fl = (ALPHA * t * (one_m_p * one_m_p) * nlog_p
          + (1.0 - ALPHA) * (1.0 - t) * (p * p) * nlog_1mp)

    if needs_mask:
        fl = jnp.where(valid, fl, 0.0)

    # Per-lane partial sums for this block (reduce over sublanes only);
    # final tiny cross-lane / cross-block reduction happens in JAX.
    loss_ref[...] = jnp.sum(fl, axis=0, keepdims=True)[None]
    npos_ref[...] = jnp.sum(t, axis=0, keepdims=True)[None]


@functools.partial(jax.jit, static_argnames=("max_block_rows",))
def focal_loss_forward(cls_logits, cls_targets, max_block_rows=MAX_BLOCK_ROWS):
    """Equivalent of focalLoss.forward: returns -objectRemoval(logits, targets).

    cls_logits, cls_targets: [B, C, H, W] (NCHW, C = anchors-per-location).
    """
    assert cls_logits.shape == cls_targets.shape
    assert max_block_rows % 8 == 0

    # Shapes are static under jit -> plain Python math (fixes the previous
    # ConcretizationTypeError from int(jnp.prod(...))).
    total = math.prod(cls_logits.shape)
    padded = ((total + LANES - 1) // LANES) * LANES
    M = padded // LANES

    def prep(a):
        flat = a.reshape(total).astype(jnp.float32)
        if padded != total:
            flat = jnp.pad(flat, (0, padded - total))  # <=127 elements, rare
        return flat.reshape(M, LANES)

    x2d = prep(cls_logits)
    t2d = prep(cls_targets)

    # Big blocks: whole array if it fits, else max_block_rows (multiple of 8).
    block_rows = M if M <= max_block_rows else max_block_rows
    num_blocks = (M + block_rows - 1) // block_rows
    needs_mask = (padded != total) or (M % block_rows != 0)

    kernel = functools.partial(_focal_kernel, total=total,
                               block_rows=block_rows, needs_mask=needs_mask)

    in_spec = pl.BlockSpec((block_rows, LANES), lambda i: (i, 0))
    part_spec = pl.BlockSpec((1, 1, LANES), lambda i: (i, 0, 0))

    loss_part, npos_part = pl.pallas_call(
        kernel,
        out_shape=(jax.ShapeDtypeStruct((num_blocks, 1, LANES), jnp.float32),
                   jax.ShapeDtypeStruct((num_blocks, 1, LANES), jnp.float32)),
        grid=(num_blocks,),
        in_specs=[in_spec, in_spec],
        out_specs=(part_spec, part_spec),
        compiler_params=pltpu.CompilerParams(
            dimension_semantics=("parallel",)),
    )(x2d, t2d)

    loss = jnp.sum(loss_part) / jnp.maximum(jnp.sum(npos_part), 1.0)
    return -loss  # focalLoss.forward returns the negated objectRemoval loss


def _reference(cls_logits, cls_targets):
    x = cls_logits.astype(jnp.float32)
    t = cls_targets.astype(jnp.float32)
    p = jax.nn.sigmoid(x)
    sp = jnp.log1p(jnp.exp(-jnp.abs(x)))
    nlog_p = jnp.maximum(-x, 0.0) + sp
    nlog_1mp = jnp.maximum(x, 0.0) + sp
    fl = (ALPHA * t * (1 - p) ** 2 * nlog_p
          + (1 - ALPHA) * (1 - t) * p ** 2 * nlog_1mp)
    return -(jnp.sum(fl) / jnp.maximum(jnp.sum(t), 1.0))


if __name__ == "__main__":
    key = jax.random.PRNGKey(0)

    def make_inputs(k, shape):
        k1, k2 = jax.random.split(k)
        logits = jax.random.normal(k1, shape, dtype=jnp.float32)
        targets = (jax.random.uniform(k2, shape) > 0.9).astype(jnp.float32)
        return logits, targets

    # 1) Main small case (NCHW: batch=2, anchors=4, BEV 16x16): single big block.
    k0, k1 = jax.random.split(key)
    x_a, t_a = make_inputs(k0, (2, 4, 16, 16))
    out_a = jax.block_until_ready(focal_loss_forward(x_a, t_a))
    ref_a = _reference(x_a, t_a)
    assert jnp.allclose(out_a, ref_a, rtol=1e-4, atol=1e-4), (out_a, ref_a)

    # 2) Ragged case (total not a multiple of 128): exercises in-kernel masking.
    x_b, t_b = make_inputs(k1, (2, 2, 50, 50))
    out_b = jax.block_until_ready(focal_loss_forward(x_b, t_b))
    ref_b = _reference(x_b, t_b)
    assert jnp.allclose(out_b, ref_b, rtol=1e-4, atol=1e-4), (out_b, ref_b)

    # 3) Same ragged case forced onto multiple parallel grid blocks
    #    (partial last block), exercising the per-block partial-sum path.
    out_c = jax.block_until_ready(
        focal_loss_forward(x_b, t_b, max_block_rows=16))
    assert jnp.allclose(out_c, ref_b, rtol=1e-4, atol=1e-4), (out_c, ref_b)

    print("KERNEL_OK")
</pallas_src>

<mosaic_0001>
module attributes {stable_mosaic.version = 11 : i64} {
  func.func @_focal_kernel(%arg0: i32, %arg1: memref<16x128xf32, #tpu.memory_space<vmem>>, %arg2: memref<16x128xf32, #tpu.memory_space<vmem>>, %arg3: memref<1x1x128xf32, #tpu.memory_space<vmem>>, %arg4: memref<1x1x128xf32, #tpu.memory_space<vmem>>) attributes {dimension_semantics = [#tpu.dimension_semantics<parallel>], iteration_bounds = array<i64: 1>, scalar_prefetch = 0 : i64, scratch_operands = 0 : i64, tpu.core_type = #tpu.core_type<tc>, window_params = [{transform_indices = @transform_0, window_bounds = array<i64: 16, 128>}, {transform_indices = @transform_1, window_bounds = array<i64: 16, 128>}, {transform_indices = @transform_2, window_bounds = array<i64: 1, 1, 128>}, {transform_indices = @transform_3, window_bounds = array<i64: 1, 1, 128>}]} {
    %c0 = arith.constant 0 : index
    %c0_0 = arith.constant 0 : index
    %0 = vector.load %arg1[%c0, %c0_0] : memref<16x128xf32, #tpu.memory_space<vmem>>, vector<16x128xf32>
    %c0_1 = arith.constant 0 : index
    %c0_2 = arith.constant 0 : index
    %1 = vector.load %arg2[%c0_1, %c0_2] : memref<16x128xf32, #tpu.memory_space<vmem>>, vector<16x128xf32>
    %2 = math.absf %0 : vector<16x128xf32>
    %cst = arith.constant 0.000000e+00 : f32
    %3 = vector.broadcast %cst : f32 to vector<16x128xf32>
    %4 = arith.subf %3, %2 : vector<16x128xf32>
    %5 = math.exp %4 : vector<16x128xf32>
    %6 = math.log1p %5 : vector<16x128xf32>
    %cst_3 = arith.constant 0.000000e+00 : f32
    %7 = vector.broadcast %cst_3 : f32 to vector<16x128xf32>
    %8 = arith.cmpf oge, %0, %7 : vector<16x128xf32>
    %cst_4 = arith.constant 1.000000e+00 : f32
    %9 = vector.broadcast %cst_4 : f32 to vector<16x128xf32>
    %10 = arith.select %8, %9, %5 : vector<16x128xi1>, vector<16x128xf32>
    %cst_5 = arith.constant 1.000000e+00 : f32
    %11 = vector.broadcast %cst_5 : f32 to vector<16x128xf32>
    %12 = arith.addf %11, %5 : vector<16x128xf32>
    %13 = tpu.reciprocal %12 : vector<16x128xf32> -> vector<16x128xf32>
    %14 = arith.mulf %10, %13 : vector<16x128xf32>
    %cst_6 = arith.constant 0.000000e+00 : f32
    %15 = vector.broadcast %cst_6 : f32 to vector<16x128xf32>
    %16 = arith.subf %15, %0 : vector<16x128xf32>
    %cst_7 = arith.constant 0.000000e+00 : f32
    %17 = vector.broadcast %cst_7 : f32 to vector<16x128xf32>
    %18 = arith.maximumf %16, %17 : vector<16x128xf32>
    %19 = arith.addf %18, %6 : vector<16x128xf32>
    %cst_8 = arith.constant 0.000000e+00 : f32
    %20 = vector.broadcast %cst_8 : f32 to vector<16x128xf32>
    %21 = arith.maximumf %0, %20 : vector<16x128xf32>
    %22 = arith.addf %21, %6 : vector<16x128xf32>
    %cst_9 = arith.constant 1.000000e+00 : f32
    %23 = vector.broadcast %cst_9 : f32 to vector<16x128xf32>
    %24 = arith.subf %23, %14 : vector<16x128xf32>
    %cst_10 = arith.constant 2.500000e-01 : f32
    %25 = vector.broadcast %cst_10 : f32 to vector<16x128xf32>
    %26 = arith.mulf %25, %1 : vector<16x128xf32>
    %27 = arith.mulf %24, %24 : vector<16x128xf32>
    %28 = arith.mulf %26, %27 : vector<16x128xf32>
    %29 = arith.mulf %28, %19 : vector<16x128xf32>
    %cst_11 = arith.constant 1.000000e+00 : f32
    %30 = vector.broadcast %cst_11 : f32 to vector<16x128xf32>
    %31 = arith.subf %30, %1 : vector<16x128xf32>
    %cst_12 = arith.constant 7.500000e-01 : f32
    %32 = vector.broadcast %cst_12 : f32 to vector<16x128xf32>
    %33 = arith.mulf %32, %31 : vector<16x128xf32>
    %34 = arith.mulf %14, %14 : vector<16x128xf32>
    %35 = arith.mulf %33, %34 : vector<16x128xf32>
    %36 = arith.mulf %35, %22 : vector<16x128xf32>
    %37 = arith.addf %29, %36 : vector<16x128xf32>
    %cst_13 = arith.constant dense<0.000000e+00> : vector<128xf32>
    %38 = vector.multi_reduction <add>, %37, %cst_13 [0] : vector<16x128xf32> to vector<128xf32>
    %39 = vector.shape_cast %38 : vector<128xf32> to vector<1x128xf32>
    %40 = vector.shape_cast %39 : vector<1x128xf32> to vector<1x1x128xf32>
    %c0_14 = arith.constant 0 : index
    %c0_15 = arith.constant 0 : index
    %c0_16 = arith.constant 0 : index
    %41 = vector.load %arg3[%c0_14, %c0_15, %c0_16] : memref<1x1x128xf32, #tpu.memory_space<vmem>>, vector<1x1x128xf32>
    tpu.vector_store %arg3[%c0_14, %c0_15, %c0_16], %40 {strides = array<i32>} : memref<1x1x128xf32, #tpu.memory_space<vmem>>, vector<1x1x128xf32>,
    %cst_17 = arith.constant dense<0.000000e+00> : vector<128xf32>
    %42 = vector.multi_reduction <add>, %1, %cst_17 [0] : vector<16x128xf32> to vector<128xf32>
    %43 = vector.shape_cast %42 : vector<128xf32> to vector<1x128xf32>
    %44 = vector.shape_cast %43 : vector<1x128xf32> to vector<1x1x128xf32>
    %c0_18 = arith.constant 0 : index
    %c0_19 = arith.constant 0 : index
    %c0_20 = arith.constant 0 : index
    %45 = vector.load %arg4[%c0_18, %c0_19, %c0_20] : memref<1x1x128xf32, #tpu.memory_space<vmem>>, vector<1x1x128xf32>
    tpu.vector_store %arg4[%c0_18, %c0_19, %c0_20], %44 {strides = array<i32>} : memref<1x1x128xf32, #tpu.memory_space<vmem>>, vector<1x1x128xf32>,
    return
  }
  func.func @transform_0(%arg0: i32) -> (i32, i32) {
    %c0_i32 = arith.constant 0 : i32
    %c0_i32_0 = arith.constant 0 : i32
    return %arg0, %c0_i32 : i32, i32
  }
  func.func @transform_1(%arg0: i32) -> (i32, i32) {
    %c0_i32 = arith.constant 0 : i32
    %c0_i32_0 = arith.constant 0 : i32
    return %arg0, %c0_i32 : i32, i32
  }
  func.func @transform_2(%arg0: i32) -> (i32, i32, i32) {
    %c0_i32 = arith.constant 0 : i32
    %c0_i32_0 = arith.constant 0 : i32
    %c0_i32_1 = arith.constant 0 : i32
    return %arg0, %c0_i32, %c0_i32_0 : i32, i32, i32
  }
  func.func @transform_3(%arg0: i32) -> (i32, i32, i32) {
    %c0_i32 = arith.constant 0 : i32
    %c0_i32_0 = arith.constant 0 : i32
    %c0_i32_1 = arith.constant 0 : i32
    return %arg0, %c0_i32, %c0_i32_0 : i32, i32, i32
  }
}

</mosaic_0001>

<bundles_post_ra>
// kernel: focal_loss_forward.1
= control target key start
LH: loop header
LB: loop body
LE: loop exit
PB: predicated region body
PF: predicated region fallthrough
CT: control target
= control target key end

     0   :  { %s230_s0 = inlined_call_operand.vmem [shape: f32[16,128], index: 0, kind: input, shape index: {}]   ;;  %s231_s1 = inlined_call_operand.vmem [shape: f32[16,128], index: 1, kind: input, shape index: {}]   ;;  %s232_s3 = inlined_call_operand.vmem [shape: f32[1,1,128], index: 3, kind: output, shape index: {1}]   ;;  %s233_s2 = inlined_call_operand.vmem [shape: f32[1,1,128], index: 2, kind: output, shape index: {0}]  }
   0x1   :  { %v170_v0 = vld [vmem:[%s230_s0] sm:$0xff]  ;;  %v175_v1 = vld [vmem:[%s230_s0 + $0x8] sm:$0xff] }
   0x2   :  { %v17_v2 = vand.u32 2147483647, %v170_v0  ;;  %v18_v3 = vand.u32 2147483647, %v175_v1  ;;  %v182_v12 = vld [vmem:[%s231_s1] sm:$0xff]  ;;  %v187_v13 = vld [vmem:[%s231_s1 + $0x8] sm:$0xff] }
   0x3   :  { %v119_v14 = vadd.f32 %v187_v13, %v182_v12  ;;  %vm43_vm0 = vcmp.ge.f32.partialorder %v170_v0, 0.0  ;;  %vm44_vm1 = vcmp.ge.f32.partialorder %v175_v1, 0.0  ;;  %v79_v18 = vsub.f32 0.0, %v170_v0 }
   0x4   :  { %v19_v4 = vsub.f32 0.0, %v17_v2  ;;  %v20_v5 = vsub.f32 0.0, %v18_v3  ;;  %v80_v19 = vsub.f32 0.0, %v175_v1  ;;  %v85_v20 = vmax.f32 %v170_v0, 0.0 }
   0x5   :  { %v120_v17 = vrot.slane %v119_v14, 4  ;;  %v99_v21 = vsub.f32 1.0, %v182_v12  ;;  %v100_v25 = vsub.f32 1.0, %v187_v13  ;;  %v81_v59 = vmax.f32 %v79_v18, 0.0 }
   0x6   :  { %v21_v6 = vmul.f32 1.442695, %v19_v4  ;;  %v23_v7 = vmul.f32 1.442695, %v20_v5  ;;  %v86_v60 = vmax.f32 %v175_v1, 0.0 }
   0x7   :  { %v121_v26 = vadd.f32 %v120_v17, %v119_v14  ;;  %v101_v5 = vmul.f32 0.75, %v99_v21 }
   0x8   :  { %135 = vpow2.f32 %v21_v6 }
   0x9   :  { %137 = vpow2.f32 %v23_v7  ;;  %v122_v41 = vrot.slane %v121_v26, 2  ;;  %v82_v7 = vmax.f32 %v80_v19, 0.0 }
   0xb   :  { %v123_v50 = vadd.f32 %v122_v41, %v121_v26 }
   0xd   :  { %v124_v56 = vrot.slane %v123_v50, 1 }
   0xe   :  { %v136_v8 = vpop.eup %135 }
   0xf   :  { %v138_v9 = vpop.eup %137  ;;  %v25_v10 = vadd.f32 1.0, %v136_v8  ;;  %v28_v15 = vmul.f32 -0.5, %v136_v8  ;;  %v31_v23 = vand.u32 2147483647, %v136_v8  ;;  %v45_v24 = vsel %vm43_vm0, 1.0, %v136_v8 }
  0x10   :  { %v34_v11 = vadd.f32 1.0, %v138_v9  ;;  %v37_v16 = vmul.f32 -0.5, %v138_v9  ;;  %v40_v30 = vand.u32 2147483647, %v138_v9  ;;  %v46_v57 = vsel %vm44_vm1, 1.0, %v138_v9 }
  0x11   :  { %139 = vrcp.f32 %v25_v10  ;;  %v29_v28 = vadd.f32 1.0, %v28_v15  ;;  %vm54_vm2 = vweird.f32 %v25_v10  ;;  %v58_v32 = vand.u32 2147483647, %v25_v10 }
  0x12   :  { %141 = vrcp.f32 %v34_v11  ;;  %v38_v29 = vadd.f32 1.0, %v37_v16  ;;  %v60_v33 = vand.u32 2147483648, %v25_v10  ;;  %vm68_vm4 = vweird.f32 %v34_v11 }
  0x13   :  { %143 = vlog2.f32 %v25_v10  ;;  %v74_v37 = vand.u32 2147483648, %v34_v11  ;;  %v72_v40 = vand.u32 2147483647, %v34_v11  ;;  %v30_v42 = vmul.f32 %v136_v8, %v29_v28 }
  0x14   :  { %145 = vlog2.f32 %v34_v11  ;;  %vm198_vm6 = vcmp.lt.f32.partialorder %v31_v23, 0.0004427343  ;;  %v39_v44 = vmul.f32 %v138_v9, %v38_v29  ;;  %v61_v48 = vor.u32 1.1754944e-38, %v60_v33 }
  0x15   :  { %vm59_vm8 = vcmp.eq.f32.partialorder %v58_v32, 8.507059e+37  ;;  %v75_v54 = vor.u32 1.1754944e-38, %v74_v37  ;;  %vm41_vm10 = vcmp.lt.f32.partialorder %v40_v30, 0.0004427343  ;;  %vm73_vm11 = vcmp.eq.f32.partialorder %v72_v40, 8.507059e+37 }
  0x16   :  { %v125_v0 = vadd.f32 %v124_v56, %v123_v50  ;;  %v102_v8 = vmul.f32 0.75, %v100_v25  ;;  %v92_v16 = vmul.f32 0.25, %v187_v13 }
  0x17   :  { %v140_v22 = vpop.eup %139 }
  0x18   :  { %v142_v27 = vpop.eup %141  ;;  %v50_v31 = vmul.f32 %v140_v22, %v25_v10  ;;  %vm55_vm3 = vweird.f32 %v140_v22  ;;  %126 = vst [vmem:[%s232_s3] sm:$0x1] %v125_v0  ;;  %v91_v10 = vmul.f32 0.25, %v182_v12 }
  0x19   :  { %v64_v34 = vmul.f32 %v142_v27, %v34_v11  ;;  %v144_v35 = vpop.eup %143  ;;  %vm69_vm5 = vweird.f32 %v142_v27  ;;  %vm203_vm7 = vmor %vm54_vm2, %vm55_vm3 }
  0x1a   :  { %v51_v36 = vsub.f32 1.0, %v50_v31  ;;  %v146_v38 = vpop.eup %145  ;;  %v27_v46 = vmul.f32 0.6931472, %v144_v35  ;;  %vm209_vm9 = vmor %vm68_vm4, %vm69_vm5 }
  0x1b   :  { %v65_v39 = vsub.f32 1.0, %v64_v34  ;;  %v36_v51 = vmul.f32 0.6931472, %v146_v38 }
  0x1c   :  { %v52_v45 = vmul.f32 %v140_v22, %v51_v36  ;;  %v33_v61 = vsel %vm198_vm6, %v30_v42, %v27_v46 }
  0x1d   :  { %v66_v49 = vmul.f32 %v142_v27, %v65_v39  ;;  %v42_v2 = vsel %vm41_vm10, %v39_v44, %v36_v51  ;;  %v87_v1 = vadd.f32 %v85_v20, %v33_v61  ;;  %v83_v18 = vadd.f32 %v81_v59, %v33_v61 }
  0x1e   :  { %v53_v52 = vadd.f32 %v140_v22, %v52_v45  ;;  %v88_v14 = vadd.f32 %v86_v60, %v42_v2  ;;  %v84_v23 = vadd.f32 %v82_v7, %v42_v2 }
  0x1f   :  { %v67_v55 = vadd.f32 %v142_v27, %v66_v49 }
  0x20   :  { %v57_v58 = vsel %vm203_vm7, %v140_v22, %v53_v52 }
  0x21   :  { %v62_v62 = vsel %vm59_vm8, %v61_v48, %v57_v58  ;;  %v71_v63 = vsel %vm209_vm9, %v142_v27, %v67_v55 }
  0x22   :  { %v76_v3 = vsel %vm73_vm11, %v75_v54, %v71_v63  ;;  %v77_v4 = vmul.f32 %v62_v62, %v45_v24 }
  0x23   :  { %v78_v6 = vmul.f32 %v76_v3, %v46_v57 }
  0x24   :  { %v89_v9 = vsub.f32 1.0, %v77_v4  ;;  %v103_v11 = vmul.f32 %v77_v4, %v77_v4 }
  0x25   :  { %v90_v15 = vsub.f32 1.0, %v78_v6  ;;  %v104_v17 = vmul.f32 %v78_v6, %v78_v6 }
  0x26   :  { %v93_v22 = vmul.f32 %v89_v9, %v89_v9  ;;  %v105_v21 = vmul.f32 %v103_v11, %v101_v5 }
  0x27   :  { %v94_v19 = vmul.f32 %v90_v15, %v90_v15  ;;  %v106_v24 = vmul.f32 %v104_v17, %v102_v8 }
  0x28   :  { %v95_v25 = vmul.f32 %v93_v22, %v91_v10  ;;  %v107_v26 = vmul.f32 %v105_v21, %v87_v1 }
  0x29   :  { %v96_v27 = vmul.f32 %v94_v19, %v92_v16  ;;  %v108_v28 = vmul.f32 %v106_v24, %v88_v14 }
  0x2a   :  { %v97_v20 = vmul.f32 %v95_v25, %v83_v18 }
  0x2b   :  { %v98_v29 = vmul.f32 %v96_v27, %v84_v23 }
  0x2c   :  { %v109_v30 = vadd.f32 %v107_v26, %v97_v20 }
  0x2d   :  { %v110_v12 = vadd.f32 %v108_v28, %v98_v29 }
  0x2f   :  { %v111_v31 = vadd.f32 %v110_v12, %v109_v30 }
  0x31   :  { %v112_v32 = vrot.slane %v111_v31, 4 }
  0x33   :  { %v113_v33 = vadd.f32 %v112_v32, %v111_v31 }
  0x35   :  { %v114_v34 = vrot.slane %v113_v33, 2 }
  0x37   :  { %v115_v13 = vadd.f32 %v114_v34, %v113_v33 }
  0x39   :  { %v116_v35 = vrot.slane %v115_v13, 1 }
  0x3b   :  { %v117_v36 = vadd.f32 %v116_v35, %v115_v13 }
  0x3d   :  { %118 = vst [vmem:[%s233_s2] sm:$0x1] %v117_v36 }

</bundles_post_ra>
